<compile_context>
chip_gen: v7x
topology: tpu7x:2x2x1
jax: 0.10.0
libtpu: 0.0.40
codegen_flags: <defaults>
</compile_context>

<pallas_src>
import functools

import jax
import jax.numpy as jnp
from jax import lax
from jax.experimental import pallas as pl
from jax.experimental.pallas import tpu as pltpu

LANE = 128   # TPU lane width
TM = 128     # output row tile (keep 128 on v5e; 256 is better on v6e/v7x MXUs)


def _round_up(v, m):
    return ((v + m - 1) // m) * m


def _pad2(a, rows, cols):
    return jnp.pad(a, ((0, rows - a.shape[0]), (0, cols - a.shape[1])))


def _leaky(x):
    # F.leaky_relu with PyTorch default negative_slope=0.01, in f32.
    return jnp.where(x > 0, x, 0.01 * x)


def fused_gcn_kernel(a_ref, xw1_ref, b1_ref, w2_ref, b2_ref, o_ref, h1_ref):
    """Fused two-layer GCN.

    a_ref  : (Np, Np)  bf16  normalized adjacency, resident (same block every step)
    xw1_ref: (Np, H1p) bf16  X @ W1 precomputed in the wrapper
    b*_ref : (1, Hp)   f32   biases
    w2_ref : (H1p,H2p) bf16  layer-2 weight
    o_ref  : (TM, H2p) bf16  output row tile
    h1_ref : (Np, H1p) bf16  VMEM scratch holding layer-1 activations for ALL nodes
    """
    i = pl.program_id(0)
    tm = o_ref.shape[0]
    n_tiles = a_ref.shape[0] // tm

    # ---- Layer 1 (all nodes), computed once on step 0, kept in the VMEM scratch.
    # Chunked over row tiles so the transient f32 intermediates stay (tm, H1p).
    @pl.when(i == 0)
    def _():
        def body(r, carry):
            row0 = pl.multiple_of(r * tm, tm)
            a_rows = a_ref[pl.ds(row0, tm), :]                       # (tm, Np) bf16
            h = jnp.dot(a_rows, xw1_ref[...],
                        preferred_element_type=jnp.float32)          # (tm, H1p) f32
            h = _leaky(h + b1_ref[...])
            h1_ref[pl.ds(row0, tm), :] = h.astype(h1_ref.dtype)
            return carry

        lax.fori_loop(0, n_tiles, body, None)

    # ---- Layer 2 for this row tile ----
    row0 = pl.multiple_of(i * tm, tm)
    a_rows = a_ref[pl.ds(row0, tm), :]                                # (tm, Np) bf16
    ah = jnp.dot(a_rows, h1_ref[...], preferred_element_type=jnp.float32)
    out = jnp.dot(ah.astype(jnp.bfloat16), w2_ref[...],
                  preferred_element_type=jnp.float32)
    out = _leaky(out + b2_ref[...])
    o_ref[...] = out.astype(o_ref.dtype)


def fused_gcn(a_norm, x, w1, b1, w2, b2):
    """leaky_relu(A @ leaky_relu(A @ X @ W1 + b1) @ W2 + b2), one pallas_call."""
    N, Fin = x.shape
    H1 = w1.shape[1]
    H2 = w2.shape[1]

    n_pad = _round_up(N, TM)
    h1_pad = _round_up(H1, LANE)
    h2_pad = _round_up(H2, LANE)

    # Hoisted small projection, full precision, no lane padding of Fin.
    xw1 = jnp.dot(x.astype(jnp.float32), w1.astype(jnp.float32))      # (N, H1) f32

    # Pad + cast at the boundary (zero padding is exact: padded rows/cols of A are 0,
    # padded columns of XW1/b1 are 0 -> padded H1 lanes stay exactly 0 after leaky).
    a_p = _pad2(a_norm, n_pad, n_pad).astype(jnp.bfloat16)
    xw1_p = _pad2(xw1, n_pad, h1_pad).astype(jnp.bfloat16)
    w2_p = _pad2(w2, h1_pad, h2_pad).astype(jnp.bfloat16)
    b1_p = _pad2(b1.reshape(1, -1), 1, h1_pad).astype(jnp.float32)
    b2_p = _pad2(b2.reshape(1, -1), 1, h2_pad).astype(jnp.float32)

    grid = (n_pad // TM,)

    # Grid-invariant inputs: same block every step -> single buffer is enough.
    def invariant(shape):
        return pl.BlockSpec(shape, lambda i: (0, 0), pipeline_mode=pl.Buffered(1))

    flops = (2 * n_pad * n_pad * h1_pad            # layer 1: A @ XW1
             + 2 * n_pad * n_pad * h1_pad          # layer 2: A @ H1
             + 2 * n_pad * h1_pad * h2_pad)        # layer 2: (A H1) @ W2
    bytes_accessed = (2 * n_pad * n_pad            # A (bf16)
                      + 2 * n_pad * h1_pad         # XW1
                      + 2 * h1_pad * h2_pad        # W2
                      + 4 * (h1_pad + h2_pad)      # biases
                      + 2 * n_pad * h2_pad)        # output (bf16)

    out_padded = pl.pallas_call(
        fused_gcn_kernel,
        out_shape=jax.ShapeDtypeStruct((n_pad, h2_pad), jnp.bfloat16),
        grid_spec=pltpu.PrefetchScalarGridSpec(
            num_scalar_prefetch=0,
            grid=grid,
            in_specs=[
                invariant((n_pad, n_pad)),      # A (dominant operand, resident once)
                invariant((n_pad, h1_pad)),     # X @ W1
                invariant((1, h1_pad)),         # b1
                invariant((h1_pad, h2_pad)),    # W2
                invariant((1, h2_pad)),         # b2
            ],
            # Lane-dense (TM x 128k) output tile, written exactly once per grid step.
            out_specs=pl.BlockSpec((TM, h2_pad), lambda i: (i, 0)),
            scratch_shapes=[pltpu.VMEM((n_pad, h1_pad), jnp.bfloat16)],
        ),
        # Row-tile axis is sequential: step 0 fills the H1 scratch that every later
        # step consumes (per-core VMEM scratch cannot be shared across TCs).
        compiler_params=pltpu.CompilerParams(
            dimension_semantics=("arbitrary",),
            vmem_limit_bytes=48 * 1024 * 1024,
        ),
        cost_estimate=pl.CostEstimate(
            flops=flops, transcendentals=0, bytes_accessed=bytes_accessed),
    )(a_p, xw1_p, b1_p, w2_p, b2_p)

    return out_padded[:N, :H2].astype(jnp.float32)


def build_normalized_adjacency(edge_index, num_nodes, dtype=jnp.float32):
    """Dense D^{-1/2}(A + I)D^{-1/2}, messages flow src -> dst (PyG GCNConv).

    Matches PyG gcn_norm semantics:
      * duplicate edges are scatter-ADDED (not deduplicated),
      * self-loops are only added to nodes that do not already have one
        (add_remaining_self_loops behaviour),
      * isolated nodes get dinv_sqrt = 0 (rows of zeros).
    """
    src, dst = edge_index[0], edge_index[1]
    a = jnp.zeros((num_nodes, num_nodes), dtype=dtype).at[dst, src].add(1.0)
    diag = jnp.diagonal(a)
    a = a + jnp.diag(jnp.where(diag > 0, 0.0, 1.0).astype(dtype))
    deg = a.sum(axis=1)
    dinv_sqrt = jnp.where(deg > 0, lax.rsqrt(deg), 0.0)
    return dinv_sqrt[:, None] * a * dinv_sqrt[None, :]


@functools.partial(jax.jit, static_argnames=())
def gcn_forward(x, edge_index, params):
    """Reproduces GCN.forward: leaky_relu(conv2(leaky_relu(conv1(x, ei)), ei)).

    (self.dropout / self.out are defined in __init__ but never used in forward.)
    """
    num_nodes = x.shape[0]
    a_norm = build_normalized_adjacency(edge_index, num_nodes, jnp.float32)
    return fused_gcn(a_norm, x,
                     params["w1"], params["b1"],
                     params["w2"], params["b2"])


def gcn_forward_reference(x, edge_index, params):
    """Pure-JAX f32 reference (no Pallas), used for a tolerance check."""
    a = build_normalized_adjacency(edge_index, x.shape[0], jnp.float32)
    h = _leaky(a @ (x @ params["w1"]) + params["b1"].reshape(1, -1))
    o = _leaky(a @ (h @ params["w2"]) + params["b2"].reshape(1, -1))
    return o


def init_params(key, f_in, hidden1, hidden2, dtype=jnp.float32):
    k1, k2 = jax.random.split(key)
    # Glorot-style deterministic init (GCNConv weight [F_in, F_out] + bias).
    w1 = jax.random.uniform(k1, (f_in, hidden1), dtype, -1.0, 1.0) * jnp.sqrt(6.0 / (f_in + hidden1))
    w2 = jax.random.uniform(k2, (hidden1, hidden2), dtype, -1.0, 1.0) * jnp.sqrt(6.0 / (hidden1 + hidden2))
    b1 = jnp.zeros((1, hidden1), dtype)
    b2 = jnp.zeros((1, hidden2), dtype)
    return {"w1": w1, "b1": b1, "w2": w2, "b2": b2}


if __name__ == "__main__":
    key = jax.random.PRNGKey(0)
    k_x, k_e, k_p = jax.random.split(key, 3)

    num_nodes = 16
    f_in = 8
    hidden1 = 32
    hidden2 = 32
    num_edges = 40

    x = jax.random.normal(k_x, (num_nodes, f_in), dtype=jnp.float32)
    edge_index = jax.random.randint(k_e, (2, num_edges), 0, num_nodes, dtype=jnp.int32)
    params = init_params(k_p, f_in, hidden1, hidden2)

    out = gcn_forward(x, edge_index, params)
    out = jax.block_until_ready(out)

    assert out.shape == (num_nodes, hidden2)
    assert out.dtype == jnp.float32
    assert bool(jnp.all(jnp.isfinite(out)))

    # Loose tolerance check against the f32 reference (kernel runs bf16 on the MXU).
    ref = jax.block_until_ready(gcn_forward_reference(x, edge_index, params))
    max_err = float(jnp.max(jnp.abs(out - ref)))
    assert max_err < 5e-2, f"max abs error vs f32 reference too large: {max_err}"

    print("KERNEL_OK")
</pallas_src>

<mosaic_0001>
module attributes {stable_mosaic.version = 11 : i64} {
  func.func @fused_gcn_kernel(%arg0: i32, %arg1: memref<128x128xbf16, #tpu.memory_space<vmem>>, %arg2: memref<128x128xbf16, #tpu.memory_space<vmem>>, %arg3: memref<1x128xf32, #tpu.memory_space<vmem>>, %arg4: memref<128x128xbf16, #tpu.memory_space<vmem>>, %arg5: memref<1x128xf32, #tpu.memory_space<vmem>>, %arg6: memref<128x128xbf16, #tpu.memory_space<vmem>>, %arg7: memref<128x128xbf16, #tpu.memory_space<vmem>>) attributes {dimension_semantics = [#tpu.dimension_semantics<arbitrary>], iteration_bounds = array<i64: 1>, scalar_prefetch = 0 : i64, scratch_operands = 1 : i64, tpu.core_type = #tpu.core_type<tc>, window_params = [{pipeline_mode = #tpu.pipeline_mode<synchronous>, transform_indices = @transform_0, window_bounds = array<i64: 128, 128>}, {pipeline_mode = #tpu.pipeline_mode<synchronous>, transform_indices = @transform_1, window_bounds = array<i64: 128, 128>}, {pipeline_mode = #tpu.pipeline_mode<synchronous>, transform_indices = @transform_2, window_bounds = array<i64: 1, 128>}, {pipeline_mode = #tpu.pipeline_mode<synchronous>, transform_indices = @transform_3, window_bounds = array<i64: 128, 128>}, {pipeline_mode = #tpu.pipeline_mode<synchronous>, transform_indices = @transform_4, window_bounds = array<i64: 1, 128>}, {transform_indices = @transform_5, window_bounds = array<i64: 128, 128>}]} {
    %c0_i32 = arith.constant 0 : i32
    %0 = arith.cmpi eq, %arg0, %c0_i32 : i32
    %1 = arith.extui %0 : i1 to i32
    %c0_i32_0 = arith.constant 0 : i32
    %2 = arith.cmpi ne, %1, %c0_i32_0 : i32
    scf.if %2 {
      %c0_i32_12 = arith.constant 0 : i32
      %c128_i32_13 = arith.constant 128 : i32
      %22 = arith.muli %c0_i32_12, %c128_i32_13 : i32
      %23 = tpu.assume_multiple %22, 128 : i32
      %24 = arith.index_cast %23 : i32 to index
      %c0_14 = arith.constant 0 : index
      %25 = vector.load %arg1[%24, %c0_14] : memref<128x128xbf16, #tpu.memory_space<vmem>>, vector<128x128xbf16>
      %c0_15 = arith.constant 0 : index
      %c0_16 = arith.constant 0 : index
      %26 = vector.load %arg2[%c0_15, %c0_16] : memref<128x128xbf16, #tpu.memory_space<vmem>>, vector<128x128xbf16>
      %cst_17 = arith.constant dense<0.000000e+00> : vector<128x128xf32>
      %27 = tpu.matmul %25, %26, %cst_17 {dimension_numbers = #tpu.dot_dimension_numbers<[1], [0], [0], [1], [0, 0, 1, 1], [], []>} : vector<128x128xbf16>, vector<128x128xbf16>, vector<128x128xf32> -> vector<128x128xf32>
      %c0_18 = arith.constant 0 : index
      %c0_19 = arith.constant 0 : index
      %28 = vector.load %arg3[%c0_18, %c0_19] : memref<1x128xf32, #tpu.memory_space<vmem>>, vector<1x128xf32>
      %29 = vector.broadcast %28 : vector<1x128xf32> to vector<128x128xf32>
      %30 = arith.addf %27, %29 : vector<128x128xf32>
      %cst_20 = arith.constant 0.000000e+00 : f32
      %31 = vector.broadcast %cst_20 : f32 to vector<128x128xf32>
      %32 = arith.cmpf ogt, %30, %31 : vector<128x128xf32>
      %cst_21 = arith.constant 0.00999999977 : f32
      %33 = vector.broadcast %cst_21 : f32 to vector<128x128xf32>
      %34 = arith.mulf %33, %30 : vector<128x128xf32>
      %35 = arith.select %32, %30, %34 : vector<128x128xi1>, vector<128x128xf32>
      %36 = arith.truncf %35 : vector<128x128xf32> to vector<128x128xbf16>
      %37 = arith.index_cast %23 : i32 to index
      %c0_22 = arith.constant 0 : index
      %38 = vector.load %arg7[%37, %c0_22] : memref<128x128xbf16, #tpu.memory_space<vmem>>, vector<128x128xbf16>
      tpu.vector_store %arg7[%37, %c0_22], %36 {strides = array<i32>} : memref<128x128xbf16, #tpu.memory_space<vmem>>, vector<128x128xbf16>,
      %c1_i32 = arith.constant 1 : i32
    } else {
    }
    %c128_i32 = arith.constant 128 : i32
    %3 = arith.muli %arg0, %c128_i32 : i32
    %4 = tpu.assume_multiple %3, 128 : i32
    %5 = arith.index_cast %4 : i32 to index
    %c0 = arith.constant 0 : index
    %6 = vector.load %arg1[%5, %c0] : memref<128x128xbf16, #tpu.memory_space<vmem>>, vector<128x128xbf16>
    %c0_1 = arith.constant 0 : index
    %c0_2 = arith.constant 0 : index
    %7 = vector.load %arg7[%c0_1, %c0_2] : memref<128x128xbf16, #tpu.memory_space<vmem>>, vector<128x128xbf16>
    %cst = arith.constant dense<0.000000e+00> : vector<128x128xf32>
    %8 = tpu.matmul %6, %7, %cst {dimension_numbers = #tpu.dot_dimension_numbers<[1], [0], [0], [1], [0, 0, 1, 1], [], []>} : vector<128x128xbf16>, vector<128x128xbf16>, vector<128x128xf32> -> vector<128x128xf32>
    %9 = arith.truncf %8 : vector<128x128xf32> to vector<128x128xbf16>
    %c0_3 = arith.constant 0 : index
    %c0_4 = arith.constant 0 : index
    %10 = vector.load %arg4[%c0_3, %c0_4] : memref<128x128xbf16, #tpu.memory_space<vmem>>, vector<128x128xbf16>
    %cst_5 = arith.constant dense<0.000000e+00> : vector<128x128xf32>
    %11 = tpu.matmul %9, %10, %cst_5 {dimension_numbers = #tpu.dot_dimension_numbers<[1], [0], [0], [1], [0, 0, 1, 1], [], []>} : vector<128x128xbf16>, vector<128x128xbf16>, vector<128x128xf32> -> vector<128x128xf32>
    %c0_6 = arith.constant 0 : index
    %c0_7 = arith.constant 0 : index
    %12 = vector.load %arg5[%c0_6, %c0_7] : memref<1x128xf32, #tpu.memory_space<vmem>>, vector<1x128xf32>
    %13 = vector.broadcast %12 : vector<1x128xf32> to vector<128x128xf32>
    %14 = arith.addf %11, %13 : vector<128x128xf32>
    %cst_8 = arith.constant 0.000000e+00 : f32
    %15 = vector.broadcast %cst_8 : f32 to vector<128x128xf32>
    %16 = arith.cmpf ogt, %14, %15 : vector<128x128xf32>
    %cst_9 = arith.constant 0.00999999977 : f32
    %17 = vector.broadcast %cst_9 : f32 to vector<128x128xf32>
    %18 = arith.mulf %17, %14 : vector<128x128xf32>
    %19 = arith.select %16, %14, %18 : vector<128x128xi1>, vector<128x128xf32>
    %20 = arith.truncf %19 : vector<128x128xf32> to vector<128x128xbf16>
    %c0_10 = arith.constant 0 : index
    %c0_11 = arith.constant 0 : index
    %21 = vector.load %arg6[%c0_10, %c0_11] : memref<128x128xbf16, #tpu.memory_space<vmem>>, vector<128x128xbf16>
    tpu.vector_store %arg6[%c0_10, %c0_11], %20 {strides = array<i32>} : memref<128x128xbf16, #tpu.memory_space<vmem>>, vector<128x128xbf16>,
    return
  }
  func.func @transform_0(%arg0: i32) -> (i32, i32) {
    %c0_i32 = arith.constant 0 : i32
    %c0_i32_0 = arith.constant 0 : i32
    %c0_i32_1 = arith.constant 0 : i32
    return %c0_i32, %c0_i32_0 : i32, i32
  }
  func.func @transform_1(%arg0: i32) -> (i32, i32) {
    %c0_i32 = arith.constant 0 : i32
    %c0_i32_0 = arith.constant 0 : i32
    %c0_i32_1 = arith.constant 0 : i32
    return %c0_i32, %c0_i32_0 : i32, i32
  }
  func.func @transform_2(%arg0: i32) -> (i32, i32) {
    %c0_i32 = arith.constant 0 : i32
    %c0_i32_0 = arith.constant 0 : i32
    %c0_i32_1 = arith.constant 0 : i32
    return %c0_i32, %c0_i32_0 : i32, i32
  }
  func.func @transform_3(%arg0: i32) -> (i32, i32) {
    %c0_i32 = arith.constant 0 : i32
    %c0_i32_0 = arith.constant 0 : i32
    %c0_i32_1 = arith.constant 0 : i32
    return %c0_i32, %c0_i32_0 : i32, i32
  }
  func.func @transform_4(%arg0: i32) -> (i32, i32) {
    %c0_i32 = arith.constant 0 : i32
    %c0_i32_0 = arith.constant 0 : i32
    %c0_i32_1 = arith.constant 0 : i32
    return %c0_i32, %c0_i32_0 : i32, i32
  }
  func.func @transform_5(%arg0: i32) -> (i32, i32) {
    %c0_i32 = arith.constant 0 : i32
    %c0_i32_0 = arith.constant 0 : i32
    return %arg0, %c0_i32 : i32, i32
  }
}

</mosaic_0001>

<bundles_post_ra>
// kernel: gcn_forward.1
= control target key start
LH: loop header
LB: loop body
LE: loop exit
PB: predicated region body
PF: predicated region fallthrough
CT: control target
= control target key end

     0   :  { %s1344_s1 = inlined_call_operand.vmem [shape: bf16[128,128], index: 1, kind: input, shape index: {}]   ;;  %s1345_s0 = inlined_call_operand.vmem [shape: bf16[128,128], index: 0, kind: input, shape index: {}]   ;;  %s1346_s3 = inlined_call_operand.vmem [shape: bf16[128,128], index: 3, kind: input, shape index: {}]   ;;  %s1347_s2 = inlined_call_operand.vmem [shape: f32[1,128], index: 2, kind: input, shape index: {}]   ;;  %s1348_s4 = inlined_call_operand.vmem [shape: f32[1,128], index: 4, kind: input, shape index: {}]   ;;  %s1349_s5 = inlined_call_operand.vmem [shape: bf16[128,128], index: 5, kind: output, shape index: {}]  }
   0x1   :  { %v1078_v0 = vld [vmem:[%s1344_s1] sm:$0xff]   ;;  %v1079_v1 = vld [vmem:[%s1344_s1 + $0x8] sm:$0xff]   ;;  %v1080_v2 = vld [vmem:[%s1344_s1 + $0x10] sm:$0xff]  }
   0x2   :  { %966 = vmatprep.subr.bf16.mxu0 %v1078_v0  ;;  %v1081_v3 = vld [vmem:[%s1344_s1 + $0x18] sm:$0xff]   ;;  %v1086_v4 = vld [vmem:[%s1345_s0] sm:$0xff]   ;;  %v1083_v6 = vld [vmem:[%s1344_s1 + $0x28] sm:$0xff]  }
   0x3   :  { %967 = vmatpush3.bf16.msra.mxu0 %v1078_v0  ;;  %982 = vmatprep.mubr.bf16.mxu0 %v1086_v4  ;;  %v1082_v5 = vld [vmem:[%s1344_s1 + $0x20] sm:$0xff]   ;;  %v1084_v7 = vld [vmem:[%s1344_s1 + $0x30] sm:$0xff]   ;;  %v1085_v8 = vld [vmem:[%s1344_s1 + $0x38] sm:$0xff]  }
   0x4   :  { %968 = vmatprep.subr.bf16.mxu0 %v1079_v1  ;;  %v1087_v9 = vld [vmem:[%s1345_s0 + $0x8] sm:$0xff]   ;;  %v1088_v10 = vld [vmem:[%s1345_s0 + $0x10] sm:$0xff]   ;;  %v1089_v11 = vld [vmem:[%s1345_s0 + $0x18] sm:$0xff]  }
   0x5   :  { %v1090_v12 = vld [vmem:[%s1345_s0 + $0x20] sm:$0xff]   ;;  %v1091_v13 = vld [vmem:[%s1345_s0 + $0x28] sm:$0xff]   ;;  %v1092_v14 = vld [vmem:[%s1345_s0 + $0x30] sm:$0xff]  }
   0x6   :  { %v1093_v15 = vld [vmem:[%s1345_s0 + $0x38] sm:$0xff]   ;;  %v1094_v16 = vld [vmem:[%s1345_s0] sm:$0xff]   ;;  %v1199_v18 = vld [vmem:[%s1346_s3 + $0x8] sm:$0xff]  }
   0x7   :  { %969 = vmatpush3.bf16.msra.mxu0 %v1079_v1  ;;  %1014 = vmatprep.mubr.bf16.mxu1 %v1094_v16  ;;  %v1194_v17 = vld [vmem:[%s1346_s3] sm:$0xff]   ;;  %v1207_v19 = vld [vmem:[%s1346_s3 + $0x10] sm:$0xff]   ;;  %v1214_v20 = vld [vmem:[%s1346_s3 + $0x18] sm:$0xff]  }
   0x8   :  { %970 = vmatprep.subr.bf16.mxu0 %v1080_v2  ;;  %v1221_v21 = vld [vmem:[%s1346_s3 + $0x20] sm:$0xff]   ;;  %v1228_v22 = vld [vmem:[%s1346_s3 + $0x28] sm:$0xff]   ;;  %v1235_v23 = vld [vmem:[%s1346_s3 + $0x30] sm:$0xff]  }
   0x9   :  { %v1243_v24 = vld [vmem:[%s1347_s2] ss:$0 sm:$0xff] }
   0xb   :  { %971 = vmatpush3.bf16.msra.mxu0 %v1080_v2 }
   0xc   :  { %972 = vmatprep.subr.bf16.mxu0 %v1081_v3 }
   0xf   :  { %973 = vmatpush3.bf16.msra.mxu0 %v1081_v3 }
  0x10   :  { %974 = vmatprep.subr.bf16.mxu0 %v1082_v5 }
  0x13   :  { %975 = vmatpush3.bf16.msra.mxu0 %v1082_v5 }
  0x14   :  { %976 = vmatprep.subr.bf16.mxu0 %v1083_v6 }
  0x17   :  { %977 = vmatpush3.bf16.msra.mxu0 %v1083_v6 }
  0x18   :  { %978 = vmatprep.subr.bf16.mxu0 %v1084_v7 }
  0x1b   :  { %979 = vmatpush3.bf16.msra.mxu0 %v1084_v7 }
  0x1c   :  { %980 = vmatprep.subr.bf16.mxu0 %v1085_v8 }
  0x1f   :  { %981 = vmatpush3.bf16.msra.mxu0 %v1085_v8 }
  0x20   :  { %1030 = vmatprep.subr.bf16.mxu0 %v1194_v17 }
  0x22   :  { %983 = vmatmul.mubr.bf16.vlgmr.msra.gmra.mrb[0].mxu0 %v1087_v9 }
  0x23   :  { %986 = vmatprep.mubr.bf16.mxu0 %v1088_v10  ;;  %1031 = vmatpush3.bf16.msra.mxu0 %v1194_v17 }
  0x24   :  { %1032 = vmatprep.subr.bf16.mxu0 %v1199_v18 }
  0x27   :  { %1033 = vmatpush3.bf16.msra.mxu0 %v1199_v18 }
  0x28   :  { %1034 = vmatprep.subr.bf16.mxu0 %v1207_v19 }
  0x2a   :  { %987 = vmatmul.mubr.bf16.gmra.mrb[4].mxu0 %v1089_v11 }
  0x2b   :  { %990 = vmatprep.mubr.bf16.mxu0 %v1090_v12  ;;  %1035 = vmatpush3.bf16.msra.mxu0 %v1207_v19 }
  0x2c   :  { %1036 = vmatprep.subr.bf16.mxu0 %v1214_v20 }
  0x2f   :  { %1037 = vmatpush3.bf16.msra.mxu0 %v1214_v20 }
  0x30   :  { %1038 = vmatprep.subr.bf16.mxu0 %v1221_v21 }
  0x32   :  { %991 = vmatmul.mubr.bf16.gmra.mrb[8].mxu0 %v1091_v13 }
  0x33   :  { %994 = vmatprep.mubr.bf16.mxu0 %v1092_v14  ;;  %1039 = vmatpush3.bf16.msra.mxu0 %v1221_v21 }
  0x34   :  { %1040 = vmatprep.subr.bf16.mxu0 %v1228_v22 }
  0x37   :  { %1041 = vmatpush3.bf16.msra.mxu0 %v1228_v22 }
  0x38   :  { %1042 = vmatprep.subr.bf16.mxu0 %v1235_v23 }
  0x3a   :  { %995 = vmatmul.mubr.bf16.gmra.mrb[12].mxu0 %v1093_v15 }
  0x3b   :  { %1043 = vmatpush3.bf16.msra.mxu0 %v1235_v23 }
  0xf5   :  { %v984_v25 = vpop.f32.mrb[0].mxu0 }
  0xf6   :  { %v203_v26 = vadd.f32 %v984_v25, %v1243_v24  ;;  %v194_v27 = vpop.f32.mrb[1].mxu0 }
  0xf7   :  { %v195_v28 = vadd.f32 %v1243_v24, %v194_v27  ;;  %v985_v29 = vpop.f32.mrb[2].mxu0 }
  0xf8   :  { %v275_v30 = vmul.f32 0.01, %v203_v26  ;;  %v206_v31 = vadd.f32 %v985_v29, %v1243_v24  ;;  %v197_v32 = vpop.f32.mrb[3].mxu0  ;;  %vm259_vm0 = vcmp.gt.f32.partialorder %v203_v26, 0.0 }
  0xf9   :  { %v273_v33 = vmul.f32 0.01, %v195_v28  ;;  %v198_v34 = vadd.f32 %v1243_v24, %v197_v32  ;;  %vm257_vm2 = vcmp.gt.f32.partialorder %v195_v28, 0.0 }
  0xfa   :  { %vm260_vm1 = vcmp.gt.f32.partialorder %v206_v31, 0.0  ;;  %v276_v35 = vmul.f32 0.01, %v206_v31  ;;  %v291_v37 = vsel %vm259_vm0, %v203_v26, %v275_v30 }
  0xfb   :  { %v274_v36 = vmul.f32 0.01, %v198_v34  ;;  %vm258_vm3 = vcmp.gt.f32.partialorder %v198_v34, 0.0  ;;  %v289_v40 = vsel %vm257_vm2, %v195_v28, %v273_v33 }
  0xfc   :  { %v292_v38 = vsel %vm260_vm1, %v206_v31, %v276_v35 }
  0xfd   :  { %v988_v39 = vpop.f32.mrb[4].mxu0  ;;  %v290_v41 = vsel %vm258_vm3, %v198_v34, %v274_v36  ;;  %v306_v42 = vpack.c.bf16 %v292_v38, %v291_v37 }
  0xfe   :  { %v219_v43 = vadd.f32 %v988_v39, %v1243_v24  ;;  %v210_v44 = vpop.f32.mrb[5].mxu0  ;;  %v305_v45 = vpack.c.bf16 %v290_v41, %v289_v40  ;;  %v1096_v41 = vld [vmem:[%s1345_s0 + $0x10] sm:$0xff]  }
  0xff   :  { %v211_v46 = vadd.f32 %v1243_v24, %v210_v44  ;;  %v989_v47 = vpop.f32.mrb[6].mxu0  ;;  %v1100_v44 = vld [vmem:[%s1345_s0 + $0x30] sm:$0xff]  }
 0x100   :  { %v279_v48 = vmul.f32 0.01, %v219_v43  ;;  %v222_v49 = vadd.f32 %v989_v47, %v1243_v24  ;;  %v213_v50 = vpop.f32.mrb[7].mxu0  ;;  %998 = vmatprep.subr.bf16.mxu1 %v305_v45  ;;  %vm263_vm4 = vcmp.gt.f32.partialorder %v219_v43, 0.0 }
 0x101   :  { %v277_v51 = vmul.f32 0.01, %v211_v46  ;;  %v214_v52 = vadd.f32 %v1243_v24, %v213_v50  ;;  %999 = vmatpush3.bf16.msra.mxu1 %v305_v45  ;;  %vm261_vm5 = vcmp.gt.f32.partialorder %v211_v46, 0.0 }
 0x102   :  { %vm264_vm6 = vcmp.gt.f32.partialorder %v222_v49, 0.0  ;;  %v280_v53 = vmul.f32 0.01, %v222_v49  ;;  %1000 = vmatprep.subr.bf16.mxu1 %v306_v42  ;;  %v295_v55 = vsel %vm263_vm4, %v219_v43, %v279_v48  ;;  %v1098_v43 = vld [vmem:[%s1345_s0 + $0x20] sm:$0xff]  }
 0x103   :  { %vm262_vm7 = vcmp.gt.f32.partialorder %v214_v52, 0.0  ;;  %v278_v54 = vmul.f32 0.01, %v214_v52  ;;  %v293_v58 = vsel %vm261_vm5, %v211_v46, %v277_v51 }
 0x104   :  { %v296_v56 = vsel %vm264_vm6, %v222_v49, %v280_v53 }
 0x105   :  { %v992_v57 = vpop.f32.mrb[8].mxu0  ;;  %1001 = vmatpush3.bf16.msra.mxu1 %v306_v42  ;;  %v294_v59 = vsel %vm262_vm7, %v214_v52, %v278_v54  ;;  %v308_v60 = vpack.c.bf16 %v296_v56, %v295_v55  ;;  %v1097_v42 = vld [vmem:[%s1345_s0 + $0x18] sm:$0xff]  }
 0x106   :  { %v235_v61 = vadd.f32 %v992_v57, %v1243_v24  ;;  %v226_v62 = vpop.f32.mrb[9].mxu0  ;;  %v307_v63 = vpack.c.bf16 %v294_v59, %v293_v58 }
 0x107   :  { %v227_v0 = vadd.f32 %v1243_v24, %v226_v62  ;;  %v993_v1 = vpop.f32.mrb[10].mxu0 }
 0x108   :  { %v283_v2 = vmul.f32 0.01, %v235_v61  ;;  %v238_v3 = vadd.f32 %v993_v1, %v1243_v24  ;;  %v229_v4 = vpop.f32.mrb[11].mxu0  ;;  %1002 = vmatprep.subr.bf16.mxu1 %v307_v63  ;;  %vm267_vm8 = vcmp.gt.f32.partialorder %v235_v61, 0.0  ;;  %v1302_v1 = vld [vmem:[%s1348_s4] ss:$0 sm:$0xff] }
 0x109   :  { %v281_v5 = vmul.f32 0.01, %v227_v0  ;;  %v230_v6 = vadd.f32 %v1243_v24, %v229_v4  ;;  %1003 = vmatpush3.bf16.msra.mxu1 %v307_v63  ;;  %vm265_vm9 = vcmp.gt.f32.partialorder %v227_v0, 0.0 }
 0x10a   :  { %vm268_vm10 = vcmp.gt.f32.partialorder %v238_v3, 0.0  ;;  %v284_v7 = vmul.f32 0.01, %v238_v3  ;;  %1004 = vmatprep.subr.bf16.mxu1 %v308_v60  ;;  %v299_v9 = vsel %vm267_vm8, %v235_v61, %v283_v2 }
 0x10b   :  { %vm266_vm11 = vcmp.gt.f32.partialorder %v230_v6, 0.0  ;;  %v282_v8 = vmul.f32 0.01, %v230_v6  ;;  %v297_v12 = vsel %vm265_vm9, %v227_v0, %v281_v5 }
 0x10c   :  { %v300_v10 = vsel %vm268_vm10, %v238_v3, %v284_v7 }
 0x10d   :  { %v996_v11 = vpop.f32.mrb[12].mxu0  ;;  %1005 = vmatpush3.bf16.msra.mxu1 %v308_v60  ;;  %v298_v13 = vsel %vm266_vm11, %v230_v6, %v282_v8  ;;  %v310_v14 = vpack.c.bf16 %v300_v10, %v299_v9 }
 0x10e   :  { %v251_v15 = vadd.f32 %v996_v11, %v1243_v24  ;;  %v242_v16 = vpop.f32.mrb[13].mxu0  ;;  %v309_v25 = vpack.c.bf16 %v298_v13, %v297_v12 }
 0x10f   :  { %v243_v26 = vadd.f32 %v1243_v24, %v242_v16  ;;  %v997_v27 = vpop.f32.mrb[14].mxu0 }
 0x110   :  { %v287_v28 = vmul.f32 0.01, %v251_v15  ;;  %v254_v29 = vadd.f32 %v997_v27, %v1243_v24  ;;  %v245_v30 = vpop.f32.mrb[15].mxu0  ;;  %1006 = vmatprep.subr.bf16.mxu1 %v309_v25  ;;  %vm271_vm12 = vcmp.gt.f32.partialorder %v251_v15, 0.0 }
 0x111   :  { %v285_v31 = vmul.f32 0.01, %v243_v26  ;;  %v246_v32 = vadd.f32 %v1243_v24, %v245_v30  ;;  %1007 = vmatpush3.bf16.msra.mxu1 %v309_v25  ;;  %vm269_vm13 = vcmp.gt.f32.partialorder %v243_v26, 0.0  ;;  %v1095_v24 = vld [vmem:[%s1345_s0 + $0x8] sm:$0xff]  }
 0x112   :  { %vm272_vm14 = vcmp.gt.f32.partialorder %v254_v29, 0.0  ;;  %v288_v33 = vmul.f32 0.01, %v254_v29  ;;  %1008 = vmatprep.subr.bf16.mxu1 %v310_v14  ;;  %v303_v35 = vsel %vm271_vm12, %v251_v15, %v287_v28 }
 0x113   :  { %vm270_vm15 = vcmp.gt.f32.partialorder %v246_v32, 0.0  ;;  %v286_v34 = vmul.f32 0.01, %v246_v32  ;;  %v301_v37 = vsel %vm269_vm13, %v243_v26, %v285_v31 }
 0x114   :  { %v304_v36 = vsel %vm272_vm14, %v254_v29, %v288_v33 }
 0x115   :  { %1009 = vmatpush3.bf16.msra.mxu1 %v310_v14  ;;  %v302_v38 = vsel %vm270_vm15, %v246_v32, %v286_v34  ;;  %v312_v39 = vpack.c.bf16 %v304_v36, %v303_v35 }
 0x116   :  { %v311_v40 = vpack.c.bf16 %v302_v38, %v301_v37 }
 0x118   :  { %1010 = vmatprep.subr.bf16.mxu1 %v311_v40 }
 0x119   :  { %1011 = vmatpush3.bf16.msra.mxu1 %v311_v40 }
 0x11a   :  { %1012 = vmatprep.subr.bf16.mxu1 %v312_v39 }
 0x11d   :  { %1013 = vmatpush3.bf16.msra.mxu1 %v312_v39 }
 0x11e   :  { %1062 = vmatprep.subr.bf16.mxu1 %v1194_v17 }
 0x120   :  { %1015 = vmatmul.mubr.bf16.vlgmr.msra.gmra.mrb[0].mxu1 %v1095_v24 }
 0x121   :  { %1018 = vmatprep.mubr.bf16.mxu1 %v1096_v41  ;;  %1070 = vmatpush3.bf16.msra.mxu1 %v1194_v17  ;;  %v1099_v17 = vld [vmem:[%s1345_s0 + $0x28] sm:$0xff]  }
 0x122   :  { %1063 = vmatprep.subr.bf16.mxu1 %v1199_v18 }
 0x125   :  { %1071 = vmatpush3.bf16.msra.mxu1 %v1199_v18  ;;  %v1101_v18 = vld [vmem:[%s1345_s0 + $0x38] sm:$0xff]  }
 0x126   :  { %1064 = vmatprep.subr.bf16.mxu1 %v1207_v19 }
 0x128   :  { %1019 = vmatmul.mubr.bf16.gmra.mrb[4].mxu1 %v1097_v42 }
 0x129   :  { %1022 = vmatprep.mubr.bf16.mxu1 %v1098_v43  ;;  %1072 = vmatpush3.bf16.msra.mxu1 %v1207_v19  ;;  %v1109_v19 = vld [vmem:[%s1346_s3 + $0x38] sm:$0xff]  }
 0x12a   :  { %1065 = vmatprep.subr.bf16.mxu1 %v1214_v20  ;;  %1044 = vmatprep.subr.bf16.mxu0 %v1109_v19 }
 0x12b   :  { %1045 = vmatpush3.bf16.msra.mxu0 %v1109_v19 }
 0x12d   :  { %1073 = vmatpush3.bf16.msra.mxu1 %v1214_v20 }
 0x12e   :  { %1066 = vmatprep.subr.bf16.mxu1 %v1221_v21 }
 0x130   :  { %1023 = vmatmul.mubr.bf16.gmra.mrb[8].mxu1 %v1099_v17 }
 0x131   :  { %1026 = vmatprep.mubr.bf16.mxu1 %v1100_v44  ;;  %1074 = vmatpush3.bf16.msra.mxu1 %v1221_v21 }
 0x132   :  { %1067 = vmatprep.subr.bf16.mxu1 %v1228_v22 }
 0x135   :  { %1075 = vmatpush3.bf16.msra.mxu1 %v1228_v22 }
 0x136   :  { %1068 = vmatprep.subr.bf16.mxu1 %v1235_v23 }
 0x138   :  { %1027 = vmatmul.mubr.bf16.gmra.mrb[12].mxu1 %v1101_v18 }
 0x139   :  { %1076 = vmatpush3.bf16.msra.mxu1 %v1235_v23 }
 0x13a   :  { %1069 = vmatprep.subr.bf16.mxu1 %v1109_v19 }
 0x13d   :  { %1077 = vmatpush3.bf16.msra.mxu1 %v1109_v19 }
 0x1f3   :  { %v1016_v20 = vpop.f32.mrb[0].mxu1 }
 0x1f4   :  { %v432_v21 = vpop.f32.mrb[1].mxu1 }
 0x1f5   :  { %v1017_v45 = vpop.f32.mrb[2].mxu1 }
 0x1f6   :  { %v496_v46 = vpack.c.bf16 %v1017_v45, %v1016_v20  ;;  %v435_v47 = vpop.f32.mrb[3].mxu1 }
 0x1f7   :  { %v495_v48 = vpack.c.bf16 %v435_v47, %v432_v21 }
 0x1f9   :  { %1046 = vmatprep.mubr.bf16.mxu0 %v495_v48 }
 0x1fa   :  { %1047 = vmatmul.mubr.bf16.vlgmr.msra.gmra.mrb[16].mxu0 %v496_v46 }
 0x1fb   :  { %v1020_v22 = vpop.f32.mrb[4].mxu1 }
 0x1fc   :  { %v448_v49 = vpop.f32.mrb[5].mxu1 }
 0x1fd   :  { %v1021_v50 = vpop.f32.mrb[6].mxu1 }
 0x1fe   :  { %v498_v23 = vpack.c.bf16 %v1021_v50, %v1020_v22  ;;  %v451_v51 = vpop.f32.mrb[7].mxu1 }
 0x1ff   :  { %v497_v52 = vpack.c.bf16 %v451_v51, %v448_v49 }
 0x201   :  { %1050 = vmatprep.mubr.bf16.mxu0 %v497_v52 }
 0x202   :  { %1051 = vmatmul.mubr.bf16.gmra.mrb[20].mxu0 %v498_v23 }
 0x203   :  { %v1024_v53 = vpop.f32.mrb[8].mxu1 }
 0x204   :  { %v464_v54 = vpop.f32.mrb[9].mxu1 }
 0x205   :  { %v1025_v55 = vpop.f32.mrb[10].mxu1 }
 0x206   :  { %v500_v56 = vpack.c.bf16 %v1025_v55, %v1024_v53  ;;  %v467_v57 = vpop.f32.mrb[11].mxu1 }
 0x207   :  { %v499_v58 = vpack.c.bf16 %v467_v57, %v464_v54 }
 0x209   :  { %1054 = vmatprep.mubr.bf16.mxu1 %v499_v58 }
 0x20a   :  { %1055 = vmatmul.mubr.bf16.vlgmr.msra.gmra.mrb[16].mxu1 %v500_v56 }
 0x20b   :  { %v1028_v59 = vpop.f32.mrb[12].mxu1 }
 0x20c   :  { %v480_v60 = vpop.f32.mrb[13].mxu1 }
 0x20d   :  { %v1029_v61 = vpop.f32.mrb[14].mxu1 }
 0x20e   :  { %v502_v62 = vpack.c.bf16 %v1029_v61, %v1028_v59  ;;  %v483_v63 = vpop.f32.mrb[15].mxu1 }
 0x20f   :  { %v501_v0 = vpack.c.bf16 %v483_v63, %v480_v60 }
 0x211   :  { %1058 = vmatprep.mubr.bf16.mxu1 %v501_v0 }
 0x212   :  { %1059 = vmatmul.mubr.bf16.gmra.mrb[20].mxu1 %v502_v62 }
 0x2cd   :  { %v1048_v2 = vpop.f32.mrb[16].mxu0 }
 0x2ce   :  { %v617_v3 = vadd.f32 %v1048_v2, %v1302_v1  ;;  %v608_v4 = vpop.f32.mrb[17].mxu0 }
 0x2cf   :  { %v609_v5 = vadd.f32 %v1302_v1, %v608_v4  ;;  %v1049_v6 = vpop.f32.mrb[18].mxu0 }
 0x2d0   :  { %v689_v7 = vmul.f32 0.01, %v617_v3  ;;  %v620_v8 = vadd.f32 %v1049_v6, %v1302_v1  ;;  %v611_v9 = vpop.f32.mrb[19].mxu0  ;;  %vm673_vm0 = vcmp.gt.f32.partialorder %v617_v3, 0.0 }
 0x2d1   :  { %v687_v10 = vmul.f32 0.01, %v609_v5  ;;  %v612_v11 = vadd.f32 %v1302_v1, %v611_v9  ;;  %vm671_vm1 = vcmp.gt.f32.partialorder %v609_v5, 0.0 }
 0x2d2   :  { %vm674_vm2 = vcmp.gt.f32.partialorder %v620_v8, 0.0  ;;  %v690_v12 = vmul.f32 0.01, %v620_v8  ;;  %v705_v14 = vsel %vm673_vm0, %v617_v3, %v689_v7 }
 0x2d3   :  { %vm672_vm3 = vcmp.gt.f32.partialorder %v612_v11, 0.0  ;;  %v688_v13 = vmul.f32 0.01, %v612_v11  ;;  %v703_v16 = vsel %vm671_vm1, %v609_v5, %v687_v10 }
 0x2d4   :  { %v706_v15 = vsel %vm674_vm2, %v620_v8, %v690_v12 }
 0x2d5   :  { %v879_v25 = vpack.c.bf16 %v706_v15, %v705_v14  ;;  %v704_v26 = vsel %vm672_vm3, %v612_v11, %v688_v13  ;;  %v1052_v27 = vpop.f32.mrb[20].mxu0 }
 0x2d6   :  { %v874_v28 = vpack.c.bf16 %v704_v26, %v703_v16  ;;  %v633_v29 = vadd.f32 %v1052_v27, %v1302_v1  ;;  %v624_v30 = vpop.f32.mrb[21].mxu0 }
 0x2d7   :  { %911 = vst [vmem:[%s1349_s5 + $0x8] sm:$0xff] %v879_v25   ;;  %v625_v31 = vadd.f32 %v1302_v1, %v624_v30  ;;  %v1053_v32 = vpop.f32.mrb[22].mxu0 }
 0x2d8   :  { %875 = vst [vmem:[%s1349_s5] sm:$0xff] %v874_v28   ;;  %v693_v33 = vmul.f32 0.01, %v633_v29  ;;  %v636_v34 = vadd.f32 %v1053_v32, %v1302_v1  ;;  %v627_v35 = vpop.f32.mrb[23].mxu0  ;;  %vm677_vm4 = vcmp.gt.f32.partialorder %v633_v29, 0.0 }
 0x2d9   :  { %v691_v36 = vmul.f32 0.01, %v625_v31  ;;  %v628_v37 = vadd.f32 %v1302_v1, %v627_v35  ;;  %vm675_vm5 = vcmp.gt.f32.partialorder %v625_v31, 0.0 }
 0x2da   :  { %vm678_vm6 = vcmp.gt.f32.partialorder %v636_v34, 0.0  ;;  %v694_v38 = vmul.f32 0.01, %v636_v34  ;;  %v709_v40 = vsel %vm677_vm4, %v633_v29, %v693_v33 }
 0x2db   :  { %vm676_vm7 = vcmp.gt.f32.partialorder %v628_v37, 0.0  ;;  %v692_v39 = vmul.f32 0.01, %v628_v37  ;;  %v707_v41 = vsel %vm675_vm5, %v625_v31, %v691_v36 }
 0x2dc   :  { %v710_v24 = vsel %vm678_vm6, %v636_v34, %v694_v38 }
 0x2dd   :  { %v889_v42 = vpack.c.bf16 %v710_v24, %v709_v40  ;;  %v708_v43 = vsel %vm676_vm7, %v628_v37, %v692_v39  ;;  %v1056_v17 = vpop.f32.mrb[16].mxu1 }
 0x2de   :  { %v884_v44 = vpack.c.bf16 %v708_v43, %v707_v41  ;;  %v649_v18 = vadd.f32 %v1056_v17, %v1302_v1  ;;  %v640_v19 = vpop.f32.mrb[17].mxu1 }
 0x2df   :  { %913 = vst [vmem:[%s1349_s5 + $0x18] sm:$0xff] %v889_v42   ;;  %v641_v20 = vadd.f32 %v1302_v1, %v640_v19  ;;  %v1057_v21 = vpop.f32.mrb[18].mxu1 }
 0x2e0   :  { %912 = vst [vmem:[%s1349_s5 + $0x10] sm:$0xff] %v884_v44   ;;  %v697_v45 = vmul.f32 0.01, %v649_v18  ;;  %v652_v46 = vadd.f32 %v1057_v21, %v1302_v1  ;;  %v643_v47 = vpop.f32.mrb[19].mxu1  ;;  %vm681_vm8 = vcmp.gt.f32.partialorder %v649_v18, 0.0 }
 0x2e1   :  { %v695_v48 = vmul.f32 0.01, %v641_v20  ;;  %v644_v22 = vadd.f32 %v1302_v1, %v643_v47  ;;  %vm679_vm9 = vcmp.gt.f32.partialorder %v641_v20, 0.0 }
 0x2e2   :  { %vm682_vm10 = vcmp.gt.f32.partialorder %v652_v46, 0.0  ;;  %v698_v49 = vmul.f32 0.01, %v652_v46  ;;  %v713_v23 = vsel %vm681_vm8, %v649_v18, %v697_v45 }
 0x2e3   :  { %vm680_vm11 = vcmp.gt.f32.partialorder %v644_v22, 0.0  ;;  %v696_v50 = vmul.f32 0.01, %v644_v22  ;;  %v711_v52 = vsel %vm679_vm9, %v641_v20, %v695_v48 }
 0x2e4   :  { %v714_v51 = vsel %vm682_vm10, %v652_v46, %v698_v49 }
 0x2e5   :  { %v899_v53 = vpack.c.bf16 %v714_v51, %v713_v23  ;;  %v712_v54 = vsel %vm680_vm11, %v644_v22, %v696_v50  ;;  %v1060_v55 = vpop.f32.mrb[20].mxu1 }
 0x2e6   :  { %v894_v56 = vpack.c.bf16 %v712_v54, %v711_v52  ;;  %v665_v57 = vadd.f32 %v1060_v55, %v1302_v1  ;;  %v656_v58 = vpop.f32.mrb[21].mxu1 }
 0x2e7   :  { %915 = vst [vmem:[%s1349_s5 + $0x28] sm:$0xff] %v899_v53   ;;  %v657_v59 = vadd.f32 %v1302_v1, %v656_v58  ;;  %v1061_v60 = vpop.f32.mrb[22].mxu1 }
 0x2e8   :  { %914 = vst [vmem:[%s1349_s5 + $0x20] sm:$0xff] %v894_v56   ;;  %v701_v61 = vmul.f32 0.01, %v665_v57  ;;  %v668_v62 = vadd.f32 %v1061_v60, %v1302_v1  ;;  %v659_v63 = vpop.f32.mrb[23].mxu1  ;;  %vm685_vm12 = vcmp.gt.f32.partialorder %v665_v57, 0.0 }
 0x2e9   :  { %v699_v0 = vmul.f32 0.01, %v657_v59  ;;  %v660_v2 = vadd.f32 %v1302_v1, %v659_v63  ;;  %vm683_vm13 = vcmp.gt.f32.partialorder %v657_v59, 0.0 }
 0x2ea   :  { %vm686_vm14 = vcmp.gt.f32.partialorder %v668_v62, 0.0  ;;  %v702_v3 = vmul.f32 0.01, %v668_v62  ;;  %v717_v5 = vsel %vm685_vm12, %v665_v57, %v701_v61 }
 0x2eb   :  { %vm684_vm15 = vcmp.gt.f32.partialorder %v660_v2, 0.0  ;;  %v700_v4 = vmul.f32 0.01, %v660_v2  ;;  %v715_v7 = vsel %vm683_vm13, %v657_v59, %v699_v0 }
 0x2ec   :  { %v718_v6 = vsel %vm686_vm14, %v668_v62, %v702_v3 }
 0x2ed   :  { %v909_v8 = vpack.c.bf16 %v718_v6, %v717_v5  ;;  %v716_v9 = vsel %vm684_vm15, %v660_v2, %v700_v4 }
 0x2ee   :  { %v904_v10 = vpack.c.bf16 %v716_v9, %v715_v7 }
 0x2ef   :  { %917 = vst [vmem:[%s1349_s5 + $0x38] sm:$0xff] %v909_v8  }
 0x2f0   :  { %916 = vst [vmem:[%s1349_s5 + $0x30] sm:$0xff] %v904_v10  }

</bundles_post_ra>
